<compile_context>
chip_gen: v7x
topology: tpu7x:2x2x1
jax: 0.10.0
libtpu: 0.0.40
codegen_flags: <defaults>
</compile_context>

<pallas_src>
import jax
import jax.numpy as jnp
from jax.experimental import pallas as pl
from jax.experimental.pallas import tpu as pltpu

_LANE = 128
# Below this many total rows, everything fits one VMEM tile -> single-step
# fused launch (the module's actual regime: a handful of news vectors).
_SMALL_ROWS = 4096


# ----------------------------------------------------------------------------
# Kernels
# ----------------------------------------------------------------------------
def _mlp_tile(x, w1, b1, w2, b2):
    """Row-wise MLP on a VMEM tile; f32 compute, f32 accumulate."""
    h = jnp.tanh(
        jnp.dot(x.astype(jnp.float32), w1, preferred_element_type=jnp.float32)
        + b1
    )
    return jnp.dot(h, w2, preferred_element_type=jnp.float32) + b2


def _fused_kernel(xc_ref, xk_ref, w1_ref, b1_ref, w2_ref, b2_ref,
                  oc_ref, ok_ref):
    # Single grid step: both whole (tiny) inputs live in VMEM; weights loaded
    # once and reused for both matmul pairs.
    w1 = w1_ref[...]
    b1 = b1_ref[...]
    w2 = w2_ref[...]
    b2 = b2_ref[...]
    oc_ref[...] = _mlp_tile(xc_ref[...], w1, b1, w2, b2).astype(oc_ref.dtype)
    ok_ref[...] = _mlp_tile(xk_ref[...], w1, b1, w2, b2).astype(ok_ref.dtype)


def _tiled_kernel(x_ref, w1_ref, b1_ref, w2_ref, b2_ref, o_ref):
    o_ref[...] = _mlp_tile(
        x_ref[...], w1_ref[...], b1_ref[...], w2_ref[...], b2_ref[...]
    ).astype(o_ref.dtype)


# ----------------------------------------------------------------------------
# Wrappers
# ----------------------------------------------------------------------------
def _pad_hidden(w1, b1, w2, b2):
    """Zero-pad the hidden dimension to a multiple of 128 lanes.

    tanh(x@0 + 0) = 0 and the corresponding W2 rows are zero, so the padded
    hidden units contribute exactly nothing -> numerics unchanged.
    """
    hidden = w1.shape[1]
    hp = ((hidden + _LANE - 1) // _LANE) * _LANE
    pad = hp - hidden
    if pad:
        w1 = jnp.pad(w1, ((0, 0), (0, pad)))
        b1 = jnp.pad(b1, ((0, 0), (0, pad)))
        w2 = jnp.pad(w2, ((0, pad), (0, 0)))
    return w1, b1, w2, b2


def _as_rows(x, input_dim):
    x2d = x.reshape(-1, input_dim)
    if x2d.dtype not in (jnp.float32, jnp.bfloat16):
        x2d = x2d.astype(jnp.float32)
    return x2d


def _mlp_2d(x2d, w1p, b1p, w2p, b2, *, tm=2048):
    """General tiled path: (M, input_dim) -> (M, output_dim)."""
    m, input_dim = x2d.shape
    hp = w1p.shape[1]
    output_dim = w2p.shape[1]

    # 8-aligned row tile; tiny batches collapse to grid=(1,).
    tm = min(tm, ((m + 7) // 8) * 8)
    grid = (pl.cdiv(m, tm),)

    itemsize = jnp.dtype(x2d.dtype).itemsize
    cost = pl.CostEstimate(
        flops=2 * m * (input_dim * hp + hp * output_dim),
        transcendentals=m * hp,
        bytes_accessed=(m * input_dim * itemsize
                        + m * output_dim * 4
                        + (w1p.size + b1p.size + w2p.size + b2.size) * 4),
    )

    return pl.pallas_call(
        _tiled_kernel,
        out_shape=jax.ShapeDtypeStruct((m, output_dim), jnp.float32),
        grid=grid,
        in_specs=[
            pl.BlockSpec((tm, input_dim), lambda i: (i, 0)),
            pl.BlockSpec((input_dim, hp), lambda i: (0, 0)),
            pl.BlockSpec((1, hp), lambda i: (0, 0)),
            pl.BlockSpec((hp, output_dim), lambda i: (0, 0)),
            pl.BlockSpec((1, output_dim), lambda i: (0, 0)),
        ],
        out_specs=pl.BlockSpec((tm, output_dim), lambda i: (i, 0)),
        compiler_params=pltpu.CompilerParams(
            # Row axis is independent -> megacore/TC sharding on v7x.
            dimension_semantics=("parallel",),
        ),
        cost_estimate=cost,
    )(x2d, w1p, b1p, w2p, b2)


def discriminator_apply(params, x):
    """Apply the MLP to a single array of shape (..., input_dim)."""
    w1, b1, w2, b2 = params["w1"], params["b1"], params["w2"], params["b2"]
    input_dim, output_dim = w1.shape[0], w2.shape[1]
    w1p, b1p, w2p, b2 = _pad_hidden(w1, b1, w2, b2)
    x2d = _as_rows(x, input_dim)
    out2d = _mlp_2d(x2d, w1p, b1p, w2p, b2)
    return out2d.reshape(*x.shape[:-1], output_dim)


def discriminator_forward(params, clicked_news_vector, candidate_news_vector):
    """Mirrors Discriminator.forward.  Small batches: ONE fused pallas_call
    with two inputs / two outputs (no concat, no output slicing)."""
    w1, b1, w2, b2 = params["w1"], params["b1"], params["w2"], params["b2"]
    input_dim, output_dim = w1.shape[0], w2.shape[1]
    w1p, b1p, w2p, b2 = _pad_hidden(w1, b1, w2, b2)

    c2d = _as_rows(clicked_news_vector, input_dim)
    k2d = _as_rows(candidate_news_vector, input_dim)
    mc, mk = c2d.shape[0], k2d.shape[0]

    if mc + mk <= _SMALL_ROWS:
        # Grid-less call: whole arrays are single VMEM blocks (default specs),
        # one launch, weights DMA'd once.
        oc, ok = pl.pallas_call(
            _fused_kernel,
            out_shape=(
                jax.ShapeDtypeStruct((mc, output_dim), jnp.float32),
                jax.ShapeDtypeStruct((mk, output_dim), jnp.float32),
            ),
        )(c2d, k2d, w1p, b1p, w2p, b2)
    else:
        # Large-batch fallback: tiled path per input (weights are tiny, the
        # extra weight DMA is negligible at this size).
        oc = _mlp_2d(c2d, w1p, b1p, w2p, b2)
        ok = _mlp_2d(k2d, w1p, b1p, w2p, b2)

    pred_clicked = oc.reshape(*clicked_news_vector.shape[:-1], output_dim)
    pred_candidate = ok.reshape(*candidate_news_vector.shape[:-1], output_dim)
    return pred_clicked, pred_candidate


def init_discriminator_params(key, input_dim, hidden_dim, output_dim):
    # Deterministic synthetic init (mimics nn.Linear uniform(-1/sqrt(fan_in), +)).
    k1, k2, k3, k4 = jax.random.split(key, 4)
    bound1 = 1.0 / jnp.sqrt(input_dim)
    bound2 = 1.0 / jnp.sqrt(hidden_dim)
    return {
        # Stored transposed vs PyTorch: (in, out) so the kernel computes x @ W.
        "w1": jax.random.uniform(k1, (input_dim, hidden_dim), jnp.float32,
                                 -bound1, bound1),
        "b1": jax.random.uniform(k2, (1, hidden_dim), jnp.float32,
                                 -bound1, bound1),
        "w2": jax.random.uniform(k3, (hidden_dim, output_dim), jnp.float32,
                                 -bound2, bound2),
        "b2": jax.random.uniform(k4, (1, output_dim), jnp.float32,
                                 -bound2, bound2),
    }


if __name__ == "__main__":
    input_dim, hidden_dim, output_dim = 32, 16, 3
    batch, n_clicked, n_candidate = 2, 8, 4

    key = jax.random.PRNGKey(0)
    kp, kc, kd, kb = jax.random.split(key, 4)

    params = init_discriminator_params(kp, input_dim, hidden_dim, output_dim)
    clicked_news_vector = jax.random.normal(
        kc, (batch, n_clicked, input_dim), jnp.float32)
    candidate_news_vector = jax.random.normal(
        kd, (batch, n_candidate, input_dim), jnp.float32)

    # Pure-JAX reference.
    def ref(x):
        h = jnp.tanh(x @ params["w1"] + params["b1"][0])
        return h @ params["w2"] + params["b2"][0]

    # 1) Fused forward (single launch, two inputs / two outputs).
    fwd = jax.jit(discriminator_forward)
    pred_clicked, pred_candidate = fwd(
        params, clicked_news_vector, candidate_news_vector)
    jax.block_until_ready((pred_clicked, pred_candidate))

    assert pred_clicked.shape == (batch, n_clicked, output_dim)
    assert pred_candidate.shape == (batch, n_candidate, output_dim)
    assert jnp.allclose(pred_clicked, ref(clicked_news_vector), atol=1e-5)
    assert jnp.allclose(pred_candidate, ref(candidate_news_vector), atol=1e-5)

    # 2) Tiled single-input path (larger M exercises the grid'd kernel).
    x_big = jax.random.normal(kb, (384, input_dim), jnp.float32)
    out_big = jax.jit(discriminator_apply)(params, x_big)
    jax.block_until_ready(out_big)
    assert out_big.shape == (384, output_dim)
    assert jnp.allclose(out_big, ref(x_big), atol=1e-5)

    print("KERNEL_OK")
</pallas_src>

<mosaic_0001>
module attributes {stable_mosaic.version = 11 : i64} {
  func.func @_fused_kernel(%arg0: memref<16x32xf32, #tpu.memory_space<vmem>>, %arg1: memref<8x32xf32, #tpu.memory_space<vmem>>, %arg2: memref<32x128xf32, #tpu.memory_space<vmem>>, %arg3: memref<1x128xf32, #tpu.memory_space<vmem>>, %arg4: memref<128x3xf32, #tpu.memory_space<vmem>>, %arg5: memref<1x3xf32, #tpu.memory_space<vmem>>, %arg6: memref<16x3xf32, #tpu.memory_space<vmem>>, %arg7: memref<8x3xf32, #tpu.memory_space<vmem>>) attributes {dimension_semantics = [], scalar_prefetch = 0 : i64, scratch_operands = 0 : i64, tpu.core_type = #tpu.core_type<tc>} {
    %c0 = arith.constant 0 : index
    %c0_0 = arith.constant 0 : index
    %0 = vector.load %arg2[%c0, %c0_0] : memref<32x128xf32, #tpu.memory_space<vmem>>, vector<32x128xf32>
    %c0_1 = arith.constant 0 : index
    %c0_2 = arith.constant 0 : index
    %1 = vector.load %arg3[%c0_1, %c0_2] : memref<1x128xf32, #tpu.memory_space<vmem>>, vector<1x128xf32>
    %c0_3 = arith.constant 0 : index
    %c0_4 = arith.constant 0 : index
    %2 = vector.load %arg4[%c0_3, %c0_4] : memref<128x3xf32, #tpu.memory_space<vmem>>, vector<128x3xf32>
    %c0_5 = arith.constant 0 : index
    %c0_6 = arith.constant 0 : index
    %3 = vector.load %arg5[%c0_5, %c0_6] : memref<1x3xf32, #tpu.memory_space<vmem>>, vector<1x3xf32>
    %c0_7 = arith.constant 0 : index
    %c0_8 = arith.constant 0 : index
    %4 = vector.load %arg0[%c0_7, %c0_8] : memref<16x32xf32, #tpu.memory_space<vmem>>, vector<16x32xf32>
    %cst = arith.constant dense<0.000000e+00> : vector<16x128xf32>
    %5 = tpu.matmul %4, %0, %cst {dimension_numbers = #tpu.dot_dimension_numbers<[1], [0], [0], [1], [0, 0, 1, 1], [], []>} : vector<16x32xf32>, vector<32x128xf32>, vector<16x128xf32> -> vector<16x128xf32>
    %6 = vector.broadcast %1 : vector<1x128xf32> to vector<16x128xf32>
    %7 = arith.addf %5, %6 : vector<16x128xf32>
    %8 = math.tanh %7 : vector<16x128xf32>
    %cst_9 = arith.constant dense<0.000000e+00> : vector<16x3xf32>
    %9 = tpu.matmul %8, %2, %cst_9 {dimension_numbers = #tpu.dot_dimension_numbers<[1], [0], [0], [1], [0, 0, 1, 1], [], []>} : vector<16x128xf32>, vector<128x3xf32>, vector<16x3xf32> -> vector<16x3xf32>
    %10 = vector.broadcast %3 : vector<1x3xf32> to vector<16x3xf32>
    %11 = arith.addf %9, %10 : vector<16x3xf32>
    %c0_10 = arith.constant 0 : index
    %c0_11 = arith.constant 0 : index
    %12 = vector.load %arg6[%c0_10, %c0_11] : memref<16x3xf32, #tpu.memory_space<vmem>>, vector<16x3xf32>
    tpu.vector_store %arg6[%c0_10, %c0_11], %11 {strides = array<i32>} : memref<16x3xf32, #tpu.memory_space<vmem>>, vector<16x3xf32>,
    %c0_12 = arith.constant 0 : index
    %c0_13 = arith.constant 0 : index
    %13 = vector.load %arg1[%c0_12, %c0_13] : memref<8x32xf32, #tpu.memory_space<vmem>>, vector<8x32xf32>
    %cst_14 = arith.constant dense<0.000000e+00> : vector<8x128xf32>
    %14 = tpu.matmul %13, %0, %cst_14 {dimension_numbers = #tpu.dot_dimension_numbers<[1], [0], [0], [1], [0, 0, 1, 1], [], []>} : vector<8x32xf32>, vector<32x128xf32>, vector<8x128xf32> -> vector<8x128xf32>
    %15 = vector.broadcast %1 : vector<1x128xf32> to vector<8x128xf32>
    %16 = arith.addf %14, %15 : vector<8x128xf32>
    %17 = math.tanh %16 : vector<8x128xf32>
    %cst_15 = arith.constant dense<0.000000e+00> : vector<8x3xf32>
    %18 = tpu.matmul %17, %2, %cst_15 {dimension_numbers = #tpu.dot_dimension_numbers<[1], [0], [0], [1], [0, 0, 1, 1], [], []>} : vector<8x128xf32>, vector<128x3xf32>, vector<8x3xf32> -> vector<8x3xf32>
    %19 = vector.broadcast %3 : vector<1x3xf32> to vector<8x3xf32>
    %20 = arith.addf %18, %19 : vector<8x3xf32>
    %c0_16 = arith.constant 0 : index
    %c0_17 = arith.constant 0 : index
    %21 = vector.load %arg7[%c0_16, %c0_17] : memref<8x3xf32, #tpu.memory_space<vmem>>, vector<8x3xf32>
    tpu.vector_store %arg7[%c0_16, %c0_17], %20 {strides = array<i32>} : memref<8x3xf32, #tpu.memory_space<vmem>>, vector<8x3xf32>,
    return
  }
}

</mosaic_0001>

<bundles_post_ra>
// kernel: discriminator_forward.1
= control target key start
LH: loop header
LB: loop body
LE: loop exit
PB: predicated region body
PF: predicated region fallthrough
CT: control target
= control target key end

     0   :  { %vm55_vm0 = vcmask 261120   ;;  %v599_v2 = vmov 0.0|0.0   ;;  %vm600_vm1 = vmmov 0   ;;  %v601_v4 = vmov 0.0   ;;  %s741_s2 = inlined_call_operand.vmem [shape: f32[32,128], index: 2, kind: input, shape index: {}]   ;;  %s742_s0 = inlined_call_operand.vmem [shape: f32[16,32], index: 0, kind: input, shape index: {}]   ;;  %s743_s4 = inlined_call_operand.vmem [shape: f32[128,3], index: 4, kind: input, shape index: {}]   ;;  %s744_s1 = inlined_call_operand.vmem [shape: f32[8,32], index: 1, kind: input, shape index: {}]   ;;  %s745_s3 = inlined_call_operand.vmem [shape: f32[1,128], index: 3, kind: input, shape index: {}]   ;;  %s746_s5 = inlined_call_operand.vmem [shape: f32[1,3], index: 5, kind: input, shape index: {}]   ;;  %s747_s7 = inlined_call_operand.vmem [shape: f32[8,3], index: 7, kind: output, shape index: {1}]   ;;  %s748_s6 = inlined_call_operand.vmem [shape: f32[16,3], index: 6, kind: output, shape index: {0}]  }
   0x1   :  { %v25_v0 = vld [vmem:[%s741_s2] sm:$0xff]  ;;  %v26_v1 = vld [vmem:[%s741_s2 + $0x8] sm:$0xff]  ;;  %560 = vmatprep.subr.bf16.mxu0 %v599_v2  ;;  %v27_v3 = vld [vmem:[%s741_s2 + $0x10] sm:$0xff]  ;;  %482 = vmatprep.mubr.msk.f32.mxu0 %vm600_vm1, %v601_v4  ;;  %vm220_vm2 = vcmask 23552  }
   0x2   :  { %v520_v5 = vpack.c.bf16 %v26_v1, %v25_v0  ;;  %v28_v6 = vld [vmem:[%s741_s2 + $0x18] sm:$0xff]  ;;  %v47_v7 = vld [vmem:[%s742_s0] sm:$0xff]  ;;  %v31_v10 = vld [vmem:[%s743_s4 + $0x8] sm:$0xff] }
   0x3   :  { %v524_v8 = vpack.c.bf16 %v28_v6, %v27_v3  ;;  %436 = vmatprep.mubr.msk.f32.mxu1 %vm55_vm0, %v47_v7  ;;  %v30_v9 = vld [vmem:[%s743_s4] sm:$0xff]  ;;  %v32_v12 = vld [vmem:[%s743_s4 + $0x10] sm:$0xff]  ;;  %v33_v13 = vld [vmem:[%s743_s4 + $0x18] sm:$0xff] }
   0x4   :  { %521 = vmatprep.subr.bf16.mxu1 %v520_v5  ;;  %562 = vmatpush3.bf16.msra.mxu0 %v520_v5  ;;  %v528_v11 = vpack.c.bf16 %v31_v10, %v30_v9  ;;  %v223_v14 = vld [vmem:[%s744_s1] sm:$0xff]  ;;  %v48_v15 = vld [vmem:[%s742_s0 + $0x8] sm:$0xff]  ;;  %v532_v16 = vpack.c.bf16 %v33_v13, %v32_v12  ;;  %v36_v20 = vld [vmem:[%s743_s4 + $0x30] sm:$0xff] }
   0x5   :  { %523 = vmatpush3.bf16.msra.mxu1 %v520_v5  ;;  %563 = vmatprep.subr.bf16.mxu0 %v599_v2  ;;  %v34_v17 = vld [vmem:[%s743_s4 + $0x20] sm:$0xff]  ;;  %v35_v18 = vld [vmem:[%s743_s4 + $0x28] sm:$0xff]  ;;  %v37_v21 = vld [vmem:[%s743_s4 + $0x38] sm:$0xff] }
   0x6   :  { %525 = vmatprep.subr.bf16.mxu1 %v524_v8  ;;  %v536_v19 = vpack.c.bf16 %v35_v18, %v34_v17  ;;  %v540_v22 = vpack.c.bf16 %v37_v21, %v36_v20  ;;  %v38_v23 = vld [vmem:[%s743_s4 + $0x40] sm:$0xff]  ;;  %v39_v24 = vld [vmem:[%s743_s4 + $0x48] sm:$0xff]  ;;  %v40_v26 = vld [vmem:[%s743_s4 + $0x50] sm:$0xff] }
   0x7   :  { %v544_v25 = vpack.c.bf16 %v39_v24, %v38_v23  ;;  %v41_v27 = vld [vmem:[%s743_s4 + $0x58] sm:$0xff]  ;;  %v42_v29 = vld [vmem:[%s743_s4 + $0x60] sm:$0xff]  ;;  %v43_v30 = vld [vmem:[%s743_s4 + $0x68] sm:$0xff] }
   0x8   :  { %565 = vmatpush3.bf16.msra.mxu0 %v524_v8  ;;  %v548_v28 = vpack.c.bf16 %v41_v27, %v40_v26  ;;  %v44_v31 = vld [vmem:[%s743_s4 + $0x70] sm:$0xff]  ;;  %v552_v32 = vpack.c.bf16 %v43_v30, %v42_v29  ;;  %v45_v33 = vld [vmem:[%s743_s4 + $0x78] sm:$0xff]  ;;  %v377_v35 = vld [vmem:[%s745_s3] ss:$0 sm:$0xff] }
   0x9   :  { %527 = vmatpush3.bf16.msra.mxu1 %v524_v8  ;;  %566 = vmatprep.subr.bf16.mxu0 %v599_v2  ;;  %v556_v34 = vpack.c.bf16 %v45_v33, %v44_v31  ;;  %v380_v46 = vld [vmem:[%s746_s5] ss:$0 sm:$0xff] }
   0xa   :  { %529 = vmatprep.subr.bf16.mxu1 %v528_v11 }
   0xb   :  { %483 = vmatmul.mubr.msk.f32.vlgmr.msra.gmra.mrb[0].mxu0 %vm55_vm0, %v223_v14 }
   0xc   :  { %437 = vmatmul.mubr.msk.f32.vlgmr.msra.gmra.mrb[0].mxu1 %vm55_vm0, %v48_v15  ;;  %568 = vmatpush3.bf16.msra.mxu0 %v528_v11 }
   0xd   :  { %531 = vmatpush3.bf16.msra.mxu1 %v528_v11  ;;  %569 = vmatprep.subr.bf16.mxu0 %v599_v2 }
   0xe   :  { %533 = vmatprep.subr.bf16.mxu1 %v532_v16  ;;  %517 = vmatprep.mubr.msk.f32.mxu0 %vm600_vm1, %v601_v4 }
  0x10   :  { %571 = vmatpush3.bf16.msra.mxu0 %v532_v16 }
  0x11   :  { %535 = vmatpush3.bf16.msra.mxu1 %v532_v16  ;;  %572 = vmatprep.subr.bf16.mxu0 %v599_v2 }
  0x12   :  { %537 = vmatprep.subr.bf16.mxu1 %v536_v19 }
  0x14   :  { %574 = vmatpush3.bf16.msra.mxu0 %v536_v19 }
  0x15   :  { %539 = vmatpush3.bf16.msra.mxu1 %v536_v19  ;;  %575 = vmatprep.subr.bf16.mxu0 %v599_v2 }
  0x16   :  { %541 = vmatprep.subr.bf16.mxu1 %v540_v22 }
  0x18   :  { %577 = vmatpush3.bf16.msra.mxu0 %v540_v22 }
  0x19   :  { %543 = vmatpush3.bf16.msra.mxu1 %v540_v22  ;;  %578 = vmatprep.subr.bf16.mxu0 %v599_v2 }
  0x1a   :  { %545 = vmatprep.subr.bf16.mxu1 %v544_v25 }
  0x1c   :  { %580 = vmatpush3.bf16.msra.mxu0 %v544_v25 }
  0x1d   :  { %547 = vmatpush3.bf16.msra.mxu1 %v544_v25  ;;  %581 = vmatprep.subr.bf16.mxu0 %v599_v2 }
  0x1e   :  { %549 = vmatprep.subr.bf16.mxu1 %v548_v28 }
  0x20   :  { %583 = vmatpush3.bf16.msra.mxu0 %v548_v28 }
  0x21   :  { %551 = vmatpush3.bf16.msra.mxu1 %v548_v28  ;;  %584 = vmatprep.subr.bf16.mxu0 %v599_v2 }
  0x22   :  { %553 = vmatprep.subr.bf16.mxu1 %v552_v32 }
  0x24   :  { %586 = vmatpush3.bf16.msra.mxu0 %v552_v32 }
  0x25   :  { %555 = vmatpush3.bf16.msra.mxu1 %v552_v32  ;;  %587 = vmatprep.subr.bf16.mxu0 %v599_v2 }
  0x26   :  { %557 = vmatprep.subr.bf16.mxu1 %v556_v34 }
  0x28   :  { %589 = vmatpush3.bf16.msra.mxu0 %v556_v34 }
  0x29   :  { %559 = vmatpush3.bf16.msra.mxu1 %v556_v34 }
  0xde   :  { %v293_v36 = vpop.f32.mrb[0].mxu0 }
  0xdf   :  { %v438_v37 = vpop.f32.mrb[0].mxu1  ;;  %v294_v38 = vadd.f32 %v377_v35, %v293_v36  ;;  %v484_v39 = vpop.f32.mrb[1].mxu0 }
  0xe0   :  { %v134_v40 = vadd.f32 %v438_v37, %v377_v35  ;;  %v128_v41 = vpop.f32.mrb[1].mxu1 }
  0xe1   :  { %v129_v42 = vadd.f32 %v377_v35, %v128_v41  ;;  %593 = vtanh.f32 %v294_v38 }
  0xe3   :  { %595 = vtanh.f32 %v129_v42 }
  0xe4   :  { %597 = vtanh.f32 %v134_v40 }
  0xeb   :  { %v594_v43 = vpop.eup %593 }
  0xec   :  { %518 = vmatmul.mubr.f32.vlgmr.msra.gmra.mrb[2].mxu0 %v594_v43 }
  0xed   :  { %v596_v44 = vpop.eup %595 }
  0xee   :  { %v598_v45 = vpop.eup %597  ;;  %471 = vmatprep.mubr.f32.mxu1 %v596_v44 }
  0xef   :  { %472 = vmatmul.mubr.f32.vlgmr.msra.gmra.mrb[2].mxu1 %v598_v45 }
 0x1bf   :  { %v364_v47 = vpop.f32.mrb[2].mxu0 }
 0x1c0   :  { %v365_v48 = vadd.f32 %v380_v46, %v364_v47  ;;  %v519_v49 = vpop.f32.mrb[3].mxu0 }
 0x1c2   :  { %v473_v50 = vpop.f32.mrb[2].mxu1  ;;  %368 = vst.msk [vmem:[%s747_s7] sm:$0xff] %vm220_vm2, %v365_v48 }
 0x1c3   :  { %v217_v51 = vadd.f32 %v473_v50, %v380_v46  ;;  %v211_v52 = vpop.f32.mrb[3].mxu1 }
 0x1c4   :  { %v212_v53 = vadd.f32 %v380_v46, %v211_v52 }
 0x1c5   :  { %222 = vst.msk [vmem:[%s748_s6 + $0x8] sm:$0xff] %vm220_vm2, %v217_v51 }
 0x1c6   :  { %221 = vst.msk [vmem:[%s748_s6] sm:$0xff] %vm220_vm2, %v212_v53 }

</bundles_post_ra>
